<compile_context>
chip_gen: v7x
topology: tpu7x:2x2x1
jax: 0.10.0
libtpu: 0.0.40
codegen_flags: <defaults>
</compile_context>

<pallas_src>
import jax
import jax.numpy as jnp
from jax import lax
from jax.experimental import pallas as pl
from jax.experimental.pallas import tpu as pltpu


def _round_up(x, m):
    return (x + m - 1) // m * m


def _cdiv(a, b):
    return -(-a // b)


# ----------------------------- Pallas kernel ---------------------------------
def _critic_fused_kernel(sa_ref, w_ref, out_ref):
    """Fused twin-Q MLP: 3 matmuls + 2 ReLUs over one VMEM-resident weight pack.

    sa_ref : bf16 [TILE_B, d_in]      sa features, a constant-1 lane, zero pad
    w_ref  : bf16 [d_in + F + 16, F]  rows [0:d_in]       = W1f (+ bias row)
                                      rows [d_in:d_in+F]  = W2f (block-diag,
                                                            + bias row, + 1 on
                                                            the bias lane)
                                      rows [d_in+F:+16]   = W3 transposed
                                                            (rows 0/1 = q1/q2)
    out_ref: f32  [16, TILE_B]        sublane 0 = q1, sublane 1 = q2
    """
    f = w_ref.shape[1]
    d_in = sa_ref.shape[1]

    # layer 1: ReLU(sa_aug @ W1f)   (bias folded via the constant-1 input lane)
    h = jnp.dot(sa_ref[...], w_ref[0:d_in, :],
                preferred_element_type=jnp.float32)
    h = jnp.maximum(h, 0.0).astype(jnp.bfloat16)

    # layer 2: ReLU(h @ W2f)        (block-diagonal; bias row via the bias lane)
    h = jnp.dot(h, w_ref[d_in:d_in + f, :],
                preferred_element_type=jnp.float32)
    h = jnp.maximum(h, 0.0).astype(jnp.bfloat16)

    # layer 3, transposed output:  (16, F) x (TILE_B, F)^T -> (16, TILE_B)
    # so the batch sits in the lane dim and the HBM writeback is ~8x smaller.
    w3t = w_ref[d_in + f:d_in + f + 16, :]
    out_ref[...] = lax.dot_general(
        w3t, h, dimension_numbers=(((1,), (1,)), ((), ())),
        preferred_element_type=jnp.float32)


def _choose_batch_tiling(B):
    """(n_steps, tile_b).  Single un-padded step for small B; balanced
    128-multiple tiles (>=2 steps, <=1024 rows) for large B so v7x can use
    both TensorCores and per-step overhead is amortized."""
    if B < 256:
        return 1, B
    n_steps = max(2, _cdiv(B, 1024))
    tile_b = _round_up(_cdiv(B, n_steps), 128)
    return n_steps, tile_b


@jax.jit
def critic_forward(sa, w_pack):
    """sa: [B, D] f32.  w_pack: [d_in + F + 16, F] bf16.  Returns (q1, q2)."""
    B, D = sa.shape
    rows, F = w_pack.shape
    d_in = rows - F - 16
    assert d_in >= D + 1, "weight pack does not match sa feature width"

    n_steps, tile_b = _choose_batch_tiling(B)
    b_pad = n_steps * tile_b

    # One fused concat+cast builds the narrow kernel input directly:
    # [sa | 1 | 0...] in bf16 (no separate 128-lane inflation pass).
    pieces = [sa.astype(jnp.bfloat16), jnp.ones((B, 1), jnp.bfloat16)]
    if d_in > D + 1:
        pieces.append(jnp.zeros((B, d_in - D - 1), jnp.bfloat16))
    sa_aug = jnp.concatenate(pieces, axis=1)
    if b_pad > B:
        sa_aug = jnp.pad(sa_aug, ((0, b_pad - B), (0, 0)))

    flops = 2 * b_pad * F * (d_in + F + 16)
    bytes_accessed = (sa_aug.size * 2 + w_pack.size * 2 + 16 * b_pad * 4)

    out = pl.pallas_call(
        _critic_fused_kernel,
        out_shape=jax.ShapeDtypeStruct((16, b_pad), jnp.float32),
        grid=(n_steps,),
        in_specs=[
            pl.BlockSpec((tile_b, d_in), lambda i: (i, 0)),   # sa tiles
            pl.BlockSpec((rows, F), lambda i: (0, 0)),        # weights: resident
        ],
        out_specs=pl.BlockSpec((16, tile_b), lambda i: (0, i)),
        compiler_params=pltpu.CompilerParams(
            dimension_semantics=("parallel",) if n_steps > 1 else ("arbitrary",),
            vmem_limit_bytes=32 * 1024 * 1024),
        cost_estimate=pl.CostEstimate(
            flops=flops, transcendentals=0, bytes_accessed=bytes_accessed),
    )(sa_aug, w_pack)

    q1 = out[0, :B].reshape(B, 1)
    q2 = out[1, :B].reshape(B, 1)
    return q1, q2


# ------------------------- parameter construction ----------------------------
def _linear_params(key, fan_in, fan_out):
    """Deterministic nn.Linear-style init; weight returned as [fan_in, fan_out]."""
    kw, kb = jax.random.split(key)
    bound = 1.0 / jnp.sqrt(jnp.float32(fan_in))
    w = jax.random.uniform(kw, (fan_in, fan_out), jnp.float32, -bound, bound)
    b = jax.random.uniform(kb, (1, fan_out), jnp.float32, -bound, bound)
    return w, b


def _random_mask(key, fan_in, fan_out, sparsity):
    """Binary mask, fraction `sparsity` of entries zeroed (deterministic)."""
    keep = jax.random.uniform(key, (fan_in, fan_out)) >= sparsity
    return keep.astype(jnp.float32)


def make_critic_params(key, sa_dim, num_hid_neurons, global_sparsity,
                       input_layer_dense=True, output_layer_dense=True):
    """One head: [sa_dim->H], [H->H], [H->1]  (num_hid_layers=2)."""
    keys = jax.random.split(key, 12)
    sparsities = [0.0 if input_layer_dense else global_sparsity,
                  global_sparsity,
                  0.0 if output_layer_dense else global_sparsity]

    def head(ks):
        w1, b1 = _linear_params(ks[0], sa_dim, num_hid_neurons)
        w2, b2 = _linear_params(ks[1], num_hid_neurons, num_hid_neurons)
        w3, b3 = _linear_params(ks[2], num_hid_neurons, 1)
        # apply sparsity masks to weights at init (weight.data.mul_(mask))
        if sparsities[0] > 0:
            w1 = w1 * _random_mask(ks[3], sa_dim, num_hid_neurons, sparsities[0])
        if sparsities[1] > 0:
            w2 = w2 * _random_mask(ks[4], num_hid_neurons, num_hid_neurons,
                                   sparsities[1])
        if sparsities[2] > 0:
            w3 = w3 * _random_mask(ks[5], num_hid_neurons, 1, sparsities[2])
        return (w1, b1, w2, b2, w3, b3)

    return head(keys[0:6]), head(keys[6:12])


def fuse_and_pack_params(params_q1, params_q2, sa_dim):
    """Fuse the twin heads (biases folded) into one bf16 weight slab.

    Layout (width F = round_up(2H + 1, 128)):
      rows [0 : d_in]        W1f   cols [0:H]=q1, [H:2H]=q2; row `sa_dim`
                             carries b1 and a 1.0 on the bias lane (col F-1).
      rows [d_in : d_in+F]   W2f   block-diagonal; row F-1 carries b2 and a
                             1.0 on the bias lane (constant propagates).
      rows [d_in+F : +16]    W3^T  row 0 = q1 output weights (+ b3_q1 on the
                             bias lane), row 1 = q2; rows 2..15 zero.
    """
    w1a, b1a, w2a, b2a, w3a, b3a = params_q1
    w1b, b1b, w2b, b2b, w3b, b3b = params_q2
    H = w1a.shape[1]
    F = max(128, _round_up(2 * H + 1, 128))
    d_in = _round_up(sa_dim + 1, 16)
    bias_col = F - 1
    one_row = sa_dim                       # row fed by the constant-1 input lane

    w1f = jnp.zeros((d_in, F), jnp.float32)
    w1f = w1f.at[:sa_dim, :H].set(w1a).at[:sa_dim, H:2 * H].set(w1b)
    w1f = (w1f.at[one_row, :H].set(b1a[0])
               .at[one_row, H:2 * H].set(b1b[0])
               .at[one_row, bias_col].set(1.0))

    w2f = jnp.zeros((F, F), jnp.float32)   # exact-zero off-diagonal blocks
    w2f = w2f.at[:H, :H].set(w2a).at[H:2 * H, H:2 * H].set(w2b)
    w2f = (w2f.at[bias_col, :H].set(b2a[0])
               .at[bias_col, H:2 * H].set(b2b[0])
               .at[bias_col, bias_col].set(1.0))

    w3t = jnp.zeros((16, F), jnp.float32)
    w3t = w3t.at[0, :H].set(w3a[:, 0]).at[0, bias_col].set(b3a[0, 0])
    w3t = w3t.at[1, H:2 * H].set(w3b[:, 0]).at[1, bias_col].set(b3b[0, 0])

    # TODO(synk): weights/biases are stored in bf16 (f32 accumulation); if this
    # feeds TD-target computation during training and drift matters, keep the
    # last layer in f32.
    return jnp.concatenate([w1f, w2f, w3t], axis=0).astype(jnp.bfloat16)


def add_fake_features(state, num_fake, noise_std, key):
    """Append `num_fake` noise columns to the state (utils.add_fake_features)."""
    if num_fake == 0:
        return state
    noise = noise_std * jax.random.normal(key, (state.shape[0], num_fake),
                                          state.dtype)
    return jnp.concatenate([state, noise], axis=1)


# ---------------------------------- main --------------------------------------
if __name__ == "__main__":
    key = jax.random.PRNGKey(0)
    k_state, k_action, k_params, k_noise = jax.random.split(key, 4)

    # small, module-consistent shapes
    B = 8
    state_dim = 12
    num_fake_features = 4            # dim_state_with_fake = 16
    action_dim = 4
    num_hid_neurons = 32
    global_sparsity = 0.5
    fake_noise_std = 0.1
    dim_state_with_fake = state_dim + num_fake_features
    sa_dim = dim_state_with_fake + action_dim     # 20

    state = jax.random.normal(k_state, (B, state_dim), jnp.float32)
    action = jax.random.normal(k_action, (B, action_dim), jnp.float32)

    # glue: fake features + (identity) permutation + concat -> sa [B, sa_dim]
    state_f = add_fake_features(state, num_fake_features, fake_noise_std, k_noise)
    # TODO(synk): set_new_permutation not exercised; permutation=None -> identity.
    sa = jnp.concatenate([state_f, action], axis=1)

    params_q1, params_q2 = make_critic_params(
        k_params, sa_dim, num_hid_neurons, global_sparsity)
    w_pack = fuse_and_pack_params(params_q1, params_q2, sa_dim)

    q1, q2 = critic_forward(sa, w_pack)
    jax.block_until_ready((q1, q2))

    assert q1.shape == (B, 1) and q2.shape == (B, 1)
    assert q1.dtype == jnp.float32 and q2.dtype == jnp.float32

    # pure-JAX reference (same bf16-operand / f32-accumulate recipe as kernel,
    # biases quantized to bf16 exactly as the folded bias lane does)
    def ref_head(x, p):
        w1, b1, w2, b2, w3, b3 = p

        def mm(a, w):
            return jnp.dot(a.astype(jnp.bfloat16), w.astype(jnp.bfloat16),
                           preferred_element_type=jnp.float32)

        def bb(b):
            return b.astype(jnp.bfloat16).astype(jnp.float32)

        h = jnp.maximum(mm(x, w1) + bb(b1), 0.0)
        h = jnp.maximum(mm(h, w2) + bb(b2), 0.0)
        return mm(h, w3) + bb(b3)

    r1 = ref_head(sa, params_q1)
    r2 = ref_head(sa, params_q2)
    assert jnp.allclose(q1, r1, atol=1e-2, rtol=1e-2), jnp.max(jnp.abs(q1 - r1))
    assert jnp.allclose(q2, r2, atol=1e-2, rtol=1e-2), jnp.max(jnp.abs(q2 - r2))

    # sanity vs. full-f32 math (looser tolerance due to bf16 weights/biases)
    def ref_head_f32(x, p):
        w1, b1, w2, b2, w3, b3 = p
        h = jnp.maximum(x @ w1 + b1, 0.0)
        h = jnp.maximum(h @ w2 + b2, 0.0)
        return h @ w3 + b3

    assert jnp.allclose(q1, ref_head_f32(sa, params_q1), atol=5e-2)
    assert jnp.allclose(q2, ref_head_f32(sa, params_q2), atol=5e-2)

    print("KERNEL_OK")
</pallas_src>

<mosaic_0001>
module attributes {stable_mosaic.version = 11 : i64} {
  func.func @_critic_fused_kernel(%arg0: i32, %arg1: memref<8x32xbf16, #tpu.memory_space<vmem>>, %arg2: memref<176x128xbf16, #tpu.memory_space<vmem>>, %arg3: memref<16x8xf32, #tpu.memory_space<vmem>>) attributes {dimension_semantics = [#tpu.dimension_semantics<arbitrary>], iteration_bounds = array<i64: 1>, scalar_prefetch = 0 : i64, scratch_operands = 0 : i64, tpu.core_type = #tpu.core_type<tc>, window_params = [{transform_indices = @transform_0, window_bounds = array<i64: 8, 32>}, {pipeline_mode = #tpu.pipeline_mode<synchronous>, transform_indices = @transform_1, window_bounds = array<i64: 176, 128>}, {transform_indices = @transform_2, window_bounds = array<i64: 16, 8>}]} {
    %c0 = arith.constant 0 : index
    %c0_0 = arith.constant 0 : index
    %0 = vector.load %arg1[%c0, %c0_0] : memref<8x32xbf16, #tpu.memory_space<vmem>>, vector<8x32xbf16>
    %c0_1 = arith.constant 0 : index
    %c0_2 = arith.constant 0 : index
    %1 = vector.load %arg2[%c0_1, %c0_2] : memref<176x128xbf16, #tpu.memory_space<vmem>>, vector<32x128xbf16>
    %cst = arith.constant dense<0.000000e+00> : vector<8x128xf32>
    %2 = tpu.matmul %0, %1, %cst {dimension_numbers = #tpu.dot_dimension_numbers<[1], [0], [0], [1], [0, 0, 1, 1], [], []>} : vector<8x32xbf16>, vector<32x128xbf16>, vector<8x128xf32> -> vector<8x128xf32>
    %cst_3 = arith.constant 0.000000e+00 : f32
    %3 = vector.broadcast %cst_3 : f32 to vector<8x128xf32>
    %4 = arith.maximumf %2, %3 : vector<8x128xf32>
    %5 = arith.truncf %4 : vector<8x128xf32> to vector<8x128xbf16>
    %c32 = arith.constant 32 : index
    %c0_4 = arith.constant 0 : index
    %6 = vector.load %arg2[%c32, %c0_4] : memref<176x128xbf16, #tpu.memory_space<vmem>>, vector<128x128xbf16>
    %cst_5 = arith.constant dense<0.000000e+00> : vector<8x128xf32>
    %7 = tpu.matmul %5, %6, %cst_5 {dimension_numbers = #tpu.dot_dimension_numbers<[1], [0], [0], [1], [0, 0, 1, 1], [], []>} : vector<8x128xbf16>, vector<128x128xbf16>, vector<8x128xf32> -> vector<8x128xf32>
    %cst_6 = arith.constant 0.000000e+00 : f32
    %8 = vector.broadcast %cst_6 : f32 to vector<8x128xf32>
    %9 = arith.maximumf %7, %8 : vector<8x128xf32>
    %10 = arith.truncf %9 : vector<8x128xf32> to vector<8x128xbf16>
    %c160 = arith.constant 160 : index
    %c0_7 = arith.constant 0 : index
    %11 = vector.load %arg2[%c160, %c0_7] : memref<176x128xbf16, #tpu.memory_space<vmem>>, vector<16x128xbf16>
    %cst_8 = arith.constant dense<0.000000e+00> : vector<16x8xf32>
    %12 = tpu.matmul %11, %10, %cst_8 {dimension_numbers = #tpu.dot_dimension_numbers<[1], [1], [0], [0], [0, 0, 1, 0], [], []>} : vector<16x128xbf16>, vector<8x128xbf16>, vector<16x8xf32> -> vector<16x8xf32>
    %c0_9 = arith.constant 0 : index
    %c0_10 = arith.constant 0 : index
    %13 = vector.load %arg3[%c0_9, %c0_10] : memref<16x8xf32, #tpu.memory_space<vmem>>, vector<16x8xf32>
    tpu.vector_store %arg3[%c0_9, %c0_10], %12 {strides = array<i32>} : memref<16x8xf32, #tpu.memory_space<vmem>>, vector<16x8xf32>,
    return
  }
  func.func @transform_0(%arg0: i32) -> (i32, i32) {
    %c0_i32 = arith.constant 0 : i32
    %c0_i32_0 = arith.constant 0 : i32
    return %arg0, %c0_i32 : i32, i32
  }
  func.func @transform_1(%arg0: i32) -> (i32, i32) {
    %c0_i32 = arith.constant 0 : i32
    %c0_i32_0 = arith.constant 0 : i32
    %c0_i32_1 = arith.constant 0 : i32
    return %c0_i32, %c0_i32_0 : i32, i32
  }
  func.func @transform_2(%arg0: i32) -> (i32, i32) {
    %c0_i32 = arith.constant 0 : i32
    %c0_i32_0 = arith.constant 0 : i32
    return %c0_i32, %arg0 : i32, i32
  }
}

</mosaic_0001>

<bundles_post_ra>
// kernel: critic_forward.1
= control target key start
LH: loop header
LB: loop body
LE: loop exit
PB: predicated region body
PF: predicated region fallthrough
CT: control target
= control target key end

     0   :  { %7 = vsyncpa [#allocation3], 0  ;;  %s352_s9 = smov [#allocation2]   ;;  %s396_s0 = inlined_call_operand.vmem [shape: bf16[8,32], index: 0, kind: input, shape index: {}]   ;;  %s397_s1 = inlined_call_operand.hbm [shape: bf16[176,128], index: 1, kind: input, shape index: {}]   ;;  %s398_s2 = inlined_call_operand.vmem [shape: f32[16,8], index: 2, kind: output, shape index: {}]  }
   0x1   :  { %s15_s10 = sshll.u32 %s352_s9, 4  ;;  %s328_s13 = scalar_lea.hbm %s397_s1, 1408  ;;  %s16_s10 = int_to_ptr.vmem [resolvable:$true] %s15_s10 }
   0x2   :  { %p329_p0 = scmp.ne.s32.totalorder %s397_s1, %s328_s13  ;;  %p332_p1 = scmp.lt.u32.totalorder %s328_s13, %s397_s1 }
   0x4   :  { %p334_p2 = pnand %p332_p1, %p329_p0 }
   0x6   :  { %337 = shalt.err (!%p334_p2)
}
   0x7   :  { %s338_s18 = scalar_lea.vmem %s16_s10, 1408  ;;  %p343_p4 = scmp.lt.s32.totalorder %s16_s10, %s16_s10 }
   0x8   :  { %p339_p3 = scmp.ne.s32.totalorder %s16_s10, %s338_s18  ;;  %p344_p5 = scmp.lt.s32.totalorder %s338_s18, %s338_s18 }
   0xa   :  { %p345_p6 = por %p344_p5, %p343_p4 }
   0xc   :  { %p346_p7 = pnand %p345_p6, %p339_p3 }
   0xe   :  { %349 = shalt.err (!%p346_p7)
}
   0xf   :  { %s353_s19 = smov 64   ;;  %s354_s20 = smov 4  }
  0x10   :  { %21 = dma.hbm_to_vmem [thread:$0]  %s397_s1, 1408, %s16_s10, [#allocation3], %s353_s19, %s353_s19, %s354_s20  }
  0x11   :  { %350 = dma.done.wait [#allocation3], 1408  }
  0x12   :  { %351 = vsyncadd [#allocation3], 4294965888  ;;  %v355_v0 = vmov 0.0   ;;  %vm356_vm0 = vmmov 0   ;;  %v317_v1 = vld [vmem:[#allocation2] sm:$0xff]   ;;  %v318_v2 = vld [vmem:[#allocation2 + $0x8] sm:$0xff]  }
  0x13   :  { %278 = vmatprep.subr.bf16.mxu0 %v355_v0  ;;  %282 = vmatprep.mubr.msk.bf16.mxu0 %vm356_vm0, %v355_v0  ;;  %v319_v3 = vld [vmem:[#allocation2 + $0x10] sm:$0xff]   ;;  %vm43_vm1 = vcmask 261120   ;;  %v320_v4 = vld [vmem:[#allocation2 + $0x18] sm:$0xff]   ;;  %v26_v5 = vld [vmem:[%s396_s0] sm:$0xf]  ;;  %vm244_vm2 = vcmask 64512  }
  0x14   :  { %286 = vmatprep.subr.bf16.mxu1 %v355_v0  ;;  %302 = vmatprep.mubr.msk.bf16.mxu1 %vm356_vm0, %v355_v0  ;;  %v321_v6 = vld [vmem:[#allocation2 + $0x20] sm:$0xff]   ;;  %v322_v7 = vld [vmem:[#allocation2 + $0x28] sm:$0xff]   ;;  %v323_v8 = vld [vmem:[#allocation2 + $0x30] sm:$0xff]  }
  0x15   :  { %279 = vmatpush3.bf16.msra.mxu0 %v317_v1  ;;  %287 = vmatpush3.bf16.msra.mxu1 %v319_v3  ;;  %v324_v9 = vld [vmem:[#allocation2 + $0x38] sm:$0xff]   ;;  %v325_v10 = vld [vmem:[#allocation2 + $0x40] sm:$0xff]   ;;  %v326_v11 = vld [vmem:[#allocation2 + $0x48] sm:$0xff]  }
  0x16   :  { %280 = vmatprep.subr.bf16.mxu0 %v355_v0  ;;  %288 = vmatprep.subr.bf16.mxu1 %v355_v0  ;;  %v327_v24 = vld [vmem:[#allocation2 + $0x50] sm:$0xff]  }
  0x19   :  { %281 = vmatpush3.bf16.msra.mxu0 %v318_v2  ;;  %289 = vmatpush3.bf16.msra.mxu1 %v320_v4 }
  0x1a   :  { %306 = vmatprep.subr.bf16.mxu0 %v355_v0  ;;  %290 = vmatprep.subr.bf16.mxu1 %v355_v0 }
  0x1c   :  { %283 = vmatmul.mubr.msk.bf16.vlgmr.msra.gmra.mrb[0].mxu0 %vm43_vm1, %v26_v5 }
  0x1d   :  { %308 = vmatprep.mubr.msk.bf16.mxu0 %vm356_vm0, %v355_v0  ;;  %291 = vmatpush3.bf16.msra.mxu1 %v321_v6 }
  0x1e   :  { %292 = vmatprep.subr.bf16.mxu1 %v355_v0 }
  0x21   :  { %293 = vmatpush3.bf16.msra.mxu1 %v322_v7 }
  0x22   :  { %294 = vmatprep.subr.bf16.mxu1 %v355_v0 }
  0x25   :  { %295 = vmatpush3.bf16.msra.mxu1 %v323_v8 }
  0x26   :  { %296 = vmatprep.subr.bf16.mxu1 %v355_v0 }
  0x29   :  { %297 = vmatpush3.bf16.msra.mxu1 %v324_v9 }
  0x2a   :  { %298 = vmatprep.subr.bf16.mxu1 %v355_v0 }
  0x2d   :  { %299 = vmatpush3.bf16.msra.mxu1 %v325_v10 }
  0x2e   :  { %300 = vmatprep.subr.bf16.mxu1 %v355_v0 }
  0x31   :  { %301 = vmatpush3.bf16.msra.mxu1 %v326_v11 }
  0xef   :  { %v81_v12 = vpop.f32.mrb[0].mxu0 }
  0xf0   :  { %v87_v13 = vmax.f32 %v81_v12, 0.0  ;;  %v284_v14 = vpop.f32.mrb[1].mxu0 }
  0xf1   :  { %v84_v15 = vpop.f32.mrb[2].mxu0 }
  0xf2   :  { %v88_v16 = vpack.c.bf16 %v87_v13, %v87_v13  ;;  %v285_v17 = vpop.f32.mrb[3].mxu0 }
  0xf4   :  { %303 = vmatmul.mubr.bf16.vlgmr.msra.gmra.mrb[0].mxu1 %v88_v16 }
 0x1c7   :  { %v187_v18 = vpop.f32.mrb[0].mxu1 }
 0x1c8   :  { %v193_v19 = vmax.f32 %v187_v18, 0.0  ;;  %v304_v20 = vpop.f32.mrb[1].mxu1 }
 0x1c9   :  { %v190_v21 = vpop.f32.mrb[2].mxu1 }
 0x1ca   :  { %v194_v22 = vpack.c.bf16 %v193_v19, %v193_v19  ;;  %v305_v23 = vpop.f32.mrb[3].mxu1 }
 0x1cc   :  { %307 = vmatpush3.bf16.xpose.msra.mxu0 %v194_v22 }
 0x1d3   :  { %309 = vmatmul.mubr.bf16.vlgmr.msra.gmra.mrb[4].mxu0 %v327_v24 }
 0x2a6   :  { %v237_v25 = vpop.f32.mrb[4].mxu0 }
 0x2a7   :  { %245 = vst.msk [vmem:[%s398_s2] sm:$0xff] %vm244_vm2, %v237_v25  ;;  %v310_v26 = vpop.f32.mrb[5].mxu0 }
 0x2a8   :  { %v240_v27 = vpop.f32.mrb[6].mxu0 }
 0x2a9   :  { %246 = vst.msk [vmem:[%s398_s2 + $0x8] sm:$0xff] %vm244_vm2, %v240_v27  ;;  %v311_v28 = vpop.f32.mrb[7].mxu0 }
 0x2aa   :  { %251 = vsyncpa [#allocation3], 1 }

</bundles_post_ra>
